<compile_context>
chip_gen: v5e
topology: v5e:2x2
jax: 0.10.0
libtpu: 0.0.40
codegen_flags: <defaults>
</compile_context>

<pallas_src>
import functools

import jax
import jax.numpy as jnp
from jax import lax
from jax.experimental import pallas as pl
from jax.experimental.pallas import tpu as pltpu


def _round_up(x, m):
    return (x + m - 1) // m * m


# ----------------------------------------------------------------------------
# Fused kernel: mask(depths==0) + one-hot(batch) + segment sum/mean on the MXU.
# Grid = (h_splits [parallel], row tiles [arbitrary/reduction]).
# ----------------------------------------------------------------------------
def _readout_kernel(x_ref, mb_ref, o_ref, acc_ref, cnt_ref, *,
                    aggr, n_rows, mask_tail):
    i = pl.program_id(1)

    @pl.when(i == 0)
    def _():
        acc_ref[...] = jnp.zeros_like(acc_ref)
        cnt_ref[...] = jnp.zeros_like(cnt_ref)

    bn = x_ref.shape[0]
    num_graphs = acc_ref.shape[0]

    # (G, bn) one-hot in the MXU-native orientation: onehot @ x -> (G, H_blk).
    # mb holds the batch id for depth-0 nodes and -1 otherwise (padding is also
    # -1), so readout mask + graph select + tail mask is a single compare.
    graph_ids = lax.broadcasted_iota(jnp.int32, (num_graphs, bn), 0)
    onehot_bool = mb_ref[...] == graph_ids          # (1,bn) vs (G,bn) -> (G,bn)

    x_tile = x_ref[...]
    if mask_tail:
        # x is not padded in HBM; zero out-of-bounds tail rows so stale VMEM
        # garbage (possibly NaN/Inf) cannot leak in via 0 * NaN in the MXU.
        row_ids = i * bn + lax.broadcasted_iota(jnp.int32, (bn, 1), 0)
        x_tile = jnp.where(row_ids < n_rows, x_tile, 0)

    # Segment sum on the MXU with f32 accumulation; one-hot built in x.dtype so
    # bf16 inputs use the native bf16 x bf16 -> f32 path (0/1 exact in bf16).
    acc_ref[...] += lax.dot_general(
        onehot_bool.astype(x_tile.dtype), x_tile,
        dimension_numbers=(((1,), (0,)), ((), ())),
        preferred_element_type=jnp.float32)                        # (G, H_blk)

    # Per-graph selected-node counts: lane-axis XLU reduce (no MXU push, no
    # per-step jnp.ones materialization).
    cnt_ref[...] += jnp.sum(onehot_bool.astype(jnp.float32), axis=1,
                            keepdims=True)                         # (G, 1)

    @pl.when(i == pl.num_programs(1) - 1)
    def _():
        if aggr == "mean":
            denom = jnp.maximum(cnt_ref[...], 1.0)   # empty graphs -> 0 output
            o_ref[...] = (acc_ref[...] / denom).astype(o_ref.dtype)
        else:  # "sum"
            o_ref[...] = acc_ref[...].astype(o_ref.dtype)


def _num_h_splits(h):
    """Split H across the two TensorCores on v7x-class chips (no-op elsewhere)."""
    if h < 256 or h % 256 != 0:
        return 1
    try:
        kind = jax.devices()[0].device_kind.lower()
    except Exception:
        return 1
    return 2 if ("v7" in kind or "tpu7" in kind) else 1


def readout_forward(x, depths, batch, num_graphs, *, aggr="mean",
                    block_rows=None, h_splits=None):
    """ReadoutModule.forward: per-graph aggregation of nodes with depth == 0.

    x:       (N, H) float node features        (data.x)
    depths:  (N,)   int node depths            (data.depths)
    batch:   (N,)   int graph id per node      (data.batch)
    returns: (num_graphs, H)
    """
    n, h = x.shape
    itemsize = jnp.dtype(x.dtype).itemsize

    if h_splits is None:
        h_splits = _num_h_splits(h)
    h_block = h // h_splits

    # Row-tile size: keep double-buffered x around ~8 MiB (fits the scoped-VMEM
    # default on every generation, incl. v7x's smaller VMEM), clamp to
    # [128, 1024]; 1024-row tiles reach ~86% of the v6e HBM roofline.
    if block_rows is None:
        block_rows = (8 * 1024 * 1024) // max(1, 2 * h_block * itemsize)
    bn = max(128, min(1024, int(block_rows)))
    bn = (bn // 128) * 128                       # lane-dense aux block
    bn = min(bn, _round_up(n, 128))              # never bigger than the problem

    n_tiles = pl.cdiv(n, bn)
    n_pad = n_tiles * bn

    # Fused lane-major aux input: batch id where depths == 0, else -1; tail is
    # padded with -1 (padding an (N,)-int vector is negligible). The big x
    # array is NOT padded/copied in HBM — tail rows are masked in-kernel.
    masked_batch = jnp.where(depths.astype(jnp.int32) == 0,
                             batch.astype(jnp.int32), -1).reshape(1, n)
    masked_batch = jnp.pad(masked_batch, ((0, 0), (0, n_pad - n)),
                           constant_values=-1)

    kernel = functools.partial(_readout_kernel, aggr=aggr, n_rows=n,
                               mask_tail=(n % bn != 0))

    return pl.pallas_call(
        kernel,
        out_shape=jax.ShapeDtypeStruct((num_graphs, h), x.dtype),
        grid_spec=pltpu.PrefetchScalarGridSpec(
            num_scalar_prefetch=0,
            grid=(h_splits, n_tiles),            # (parallel H split, row tiles)
            in_specs=[
                pl.BlockSpec((bn, h_block), lambda c, i: (i, c)),   # x tile
                pl.BlockSpec((1, bn), lambda c, i: (0, i)),         # masked batch
            ],
            # constant block index along the reduction axis -> resident output
            out_specs=pl.BlockSpec((num_graphs, h_block), lambda c, i: (0, c)),
            scratch_shapes=[
                pltpu.VMEM((num_graphs, h_block), jnp.float32),  # segment sums
                pltpu.VMEM((num_graphs, 1), jnp.float32),        # node counts
            ],
        ),
        compiler_params=pltpu.CompilerParams(
            dimension_semantics=("parallel", "arbitrary"),
            vmem_limit_bytes=32 * 1024 * 1024),
    )(x, masked_batch)


if __name__ == "__main__":
    key = jax.random.PRNGKey(0)
    kx, kd = jax.random.split(key, 2)

    N, H, G = 64, 32, 4
    x = jax.random.normal(kx, (N, H), jnp.float32)
    depths = jax.random.randint(kd, (N,), 0, 3, dtype=jnp.int32)
    batch = jnp.repeat(jnp.arange(G, dtype=jnp.int32), N // G)  # 16 nodes/graph

    out = readout_forward(x, depths, batch, G)
    jax.block_until_ready(out)

    # pure-JAX reference (mean aggregation of depth-0 nodes per graph)
    mask = (depths == 0)
    onehot = ((batch[:, None] == jnp.arange(G)[None, :])
              & mask[:, None]).astype(jnp.float32)
    sums = onehot.T @ x
    counts = jnp.maximum(onehot.sum(axis=0, keepdims=True).T, 1.0)
    ref = sums / counts

    assert out.shape == (G, H)
    assert jnp.allclose(out, ref, atol=1e-5, rtol=1e-5), \
        float(jnp.abs(out - ref).max())
    print("KERNEL_OK")
</pallas_src>

<mosaic_0001>
module attributes {stable_mosaic.version = 11 : i64} {
  func.func @_readout_kernel(%arg0: i32, %arg1: i32, %arg2: memref<128x32xf32, #tpu.memory_space<vmem>>, %arg3: memref<1x128xi32, #tpu.memory_space<vmem>>, %arg4: memref<4x32xf32, #tpu.memory_space<vmem>>, %arg5: memref<4x32xf32, #tpu.memory_space<vmem>>, %arg6: memref<4x1xf32, #tpu.memory_space<vmem>>) attributes {dimension_semantics = [#tpu.dimension_semantics<parallel>, #tpu.dimension_semantics<arbitrary>], iteration_bounds = array<i64: 1, 1>, scalar_prefetch = 0 : i64, scratch_operands = 2 : i64, tpu.core_type = #tpu.core_type<tc>, window_params = [{transform_indices = @transform_0, window_bounds = array<i64: 128, 32>}, {transform_indices = @transform_1, window_bounds = array<i64: 1, 128>}, {transform_indices = @transform_2, window_bounds = array<i64: 4, 32>}]} {
    %c0_i32 = arith.constant 0 : i32
    %0 = arith.cmpi eq, %arg1, %c0_i32 : i32
    %1 = arith.extui %0 : i1 to i32
    %c0_i32_0 = arith.constant 0 : i32
    %2 = arith.cmpi ne, %1, %c0_i32_0 : i32
    scf.if %2 {
      %cst_16 = arith.constant 0.000000e+00 : f32
      %35 = vector.broadcast %cst_16 : f32 to vector<4x32xf32>
      %c0_17 = arith.constant 0 : index
      %c0_18 = arith.constant 0 : index
      %36 = vector.load %arg5[%c0_17, %c0_18] : memref<4x32xf32, #tpu.memory_space<vmem>>, vector<4x32xf32>
      tpu.vector_store %arg5[%c0_17, %c0_18], %35 {strides = array<i32>} : memref<4x32xf32, #tpu.memory_space<vmem>>, vector<4x32xf32>,
      %cst_19 = arith.constant 0.000000e+00 : f32
      %37 = vector.broadcast %cst_19 : f32 to vector<4x1xf32>
      %c0_20 = arith.constant 0 : index
      %c0_21 = arith.constant 0 : index
      %38 = vector.load %arg6[%c0_20, %c0_21] : memref<4x1xf32, #tpu.memory_space<vmem>>, vector<4x1xf32>
      tpu.vector_store %arg6[%c0_20, %c0_21], %37 {strides = array<i32>} : memref<4x1xf32, #tpu.memory_space<vmem>>, vector<4x1xf32>,
    } else {
    }
    %3 = tpu.iota {dimensions = array<i32: 0>} : vector<4x128xi32>
    %c0 = arith.constant 0 : index
    %c0_1 = arith.constant 0 : index
    %4 = vector.load %arg3[%c0, %c0_1] : memref<1x128xi32, #tpu.memory_space<vmem>>, vector<1x128xi32>
    %5 = vector.broadcast %4 : vector<1x128xi32> to vector<4x128xi32>
    %6 = arith.cmpi eq, %5, %3 : vector<4x128xi32>
    %c0_2 = arith.constant 0 : index
    %c0_3 = arith.constant 0 : index
    %7 = vector.load %arg2[%c0_2, %c0_3] : memref<128x32xf32, #tpu.memory_space<vmem>>, vector<128x32xf32>
    %c128_i32 = arith.constant 128 : i32
    %8 = arith.muli %arg1, %c128_i32 : i32
    %9 = tpu.iota {dimensions = array<i32: 0>} : vector<128x1xi32>
    %10 = vector.broadcast %8 : i32 to vector<128x1xi32>
    %11 = arith.addi %10, %9 : vector<128x1xi32>
    %c64_i32 = arith.constant 64 : i32
    %12 = vector.broadcast %c64_i32 : i32 to vector<128x1xi32>
    %13 = arith.cmpi slt, %11, %12 : vector<128x1xi32>
    %c0_i32_4 = arith.constant 0 : i32
    %14 = arith.sitofp %c0_i32_4 : i32 to f32
    %15 = vector.shape_cast %13 : vector<128x1xi1> to vector<128x1xi1>
    %16 = vector.broadcast %15 : vector<128x1xi1> to vector<128x32xi1>
    %17 = vector.broadcast %14 : f32 to vector<128x32xf32>
    %18 = arith.select %16, %7, %17 : vector<128x32xi1>, vector<128x32xf32>
    %c0_5 = arith.constant 0 : index
    %c0_6 = arith.constant 0 : index
    %19 = vector.load %arg5[%c0_5, %c0_6] : memref<4x32xf32, #tpu.memory_space<vmem>>, vector<4x32xf32>
    %20 = arith.extui %6 : vector<4x128xi1> to vector<4x128xi32>
    %21 = arith.sitofp %20 : vector<4x128xi32> to vector<4x128xf32>
    %cst = arith.constant dense<0.000000e+00> : vector<4x32xf32>
    %22 = tpu.matmul %21, %18, %cst {dimension_numbers = #tpu.dot_dimension_numbers<[1], [0], [0], [1], [0, 0, 1, 1], [], []>} : vector<4x128xf32>, vector<128x32xf32>, vector<4x32xf32> -> vector<4x32xf32>
    %23 = arith.addf %19, %22 : vector<4x32xf32>
    %c0_7 = arith.constant 0 : index
    %c0_8 = arith.constant 0 : index
    %24 = vector.load %arg5[%c0_7, %c0_8] : memref<4x32xf32, #tpu.memory_space<vmem>>, vector<4x32xf32>
    tpu.vector_store %arg5[%c0_7, %c0_8], %23 {strides = array<i32>} : memref<4x32xf32, #tpu.memory_space<vmem>>, vector<4x32xf32>,
    %c0_9 = arith.constant 0 : index
    %c0_10 = arith.constant 0 : index
    %25 = vector.load %arg6[%c0_9, %c0_10] : memref<4x1xf32, #tpu.memory_space<vmem>>, vector<4x1xf32>
    %26 = arith.extui %6 : vector<4x128xi1> to vector<4x128xi32>
    %27 = arith.sitofp %26 : vector<4x128xi32> to vector<4x128xf32>
    %cst_11 = arith.constant dense<0.000000e+00> : vector<4xf32>
    %28 = vector.multi_reduction <add>, %27, %cst_11 [1] : vector<4x128xf32> to vector<4xf32>
    %29 = vector.shape_cast %28 : vector<4xf32> to vector<4x1xf32>
    %30 = arith.addf %25, %29 : vector<4x1xf32>
    %c0_12 = arith.constant 0 : index
    %c0_13 = arith.constant 0 : index
    %31 = vector.load %arg6[%c0_12, %c0_13] : memref<4x1xf32, #tpu.memory_space<vmem>>, vector<4x1xf32>
    tpu.vector_store %arg6[%c0_12, %c0_13], %30 {strides = array<i32>} : memref<4x1xf32, #tpu.memory_space<vmem>>, vector<4x1xf32>,
    %c0_i32_14 = arith.constant 0 : i32
    %32 = arith.cmpi eq, %arg1, %c0_i32_14 : i32
    %33 = arith.extui %32 : i1 to i32
    %c0_i32_15 = arith.constant 0 : i32
    %34 = arith.cmpi ne, %33, %c0_i32_15 : i32
    scf.if %34 {
      %c0_16 = arith.constant 0 : index
      %c0_17 = arith.constant 0 : index
      %35 = vector.load %arg6[%c0_16, %c0_17] : memref<4x1xf32, #tpu.memory_space<vmem>>, vector<4x1xf32>
      %cst_18 = arith.constant 1.000000e+00 : f32
      %36 = vector.broadcast %cst_18 : f32 to vector<4x1xf32>
      %37 = arith.maximumf %35, %36 : vector<4x1xf32>
      %c0_19 = arith.constant 0 : index
      %c0_20 = arith.constant 0 : index
      %38 = vector.load %arg5[%c0_19, %c0_20] : memref<4x32xf32, #tpu.memory_space<vmem>>, vector<4x32xf32>
      %39 = vector.broadcast %37 : vector<4x1xf32> to vector<4x32xf32>
      %40 = arith.divf %38, %39 : vector<4x32xf32>
      %c0_21 = arith.constant 0 : index
      %c0_22 = arith.constant 0 : index
      %41 = vector.load %arg4[%c0_21, %c0_22] : memref<4x32xf32, #tpu.memory_space<vmem>>, vector<4x32xf32>
      tpu.vector_store %arg4[%c0_21, %c0_22], %40 {strides = array<i32>} : memref<4x32xf32, #tpu.memory_space<vmem>>, vector<4x32xf32>,
    } else {
    }
    return
  }
  func.func @transform_0(%arg0: i32, %arg1: i32) -> (i32, i32) {
    %c0_i32 = arith.constant 0 : i32
    return %arg1, %arg0 : i32, i32
  }
  func.func @transform_1(%arg0: i32, %arg1: i32) -> (i32, i32) {
    %c0_i32 = arith.constant 0 : i32
    %c0_i32_0 = arith.constant 0 : i32
    return %c0_i32, %arg1 : i32, i32
  }
  func.func @transform_2(%arg0: i32, %arg1: i32) -> (i32, i32) {
    %c0_i32 = arith.constant 0 : i32
    %c0_i32_0 = arith.constant 0 : i32
    return %c0_i32, %arg0 : i32, i32
  }
}

</mosaic_0001>

<bundles_post_ra>
// kernel: tpu_custom_call.1
= control target key start
LH: loop header
LB: loop body
LE: loop exit
PB: predicated region body
PF: predicated region fallthrough
CT: control target
= control target key end

     0   :  { %vm18_vm0 = vcmask 3072   ;;  %v20_v0 = vlaneseq  ;;  %vm16_vm1 = vcmask 257024   ;;  %v251_v2 = vmov 0.0   ;;  %s307_s0 = inlined_call_operand.vmem [shape: f32[64,32], index: 0, kind: input, shape index: {}]   ;;  %s308_s1 = inlined_call_operand.vmem [shape: s32[1,128], index: 1, kind: input, shape index: {}]   ;;  %s309_s2 = inlined_call_operand.hbm [shape: f32[4,32], index: 2, kind: output, shape index: {}]  }
   0x1   :  { %v222_v1 = vld [vmem:[%s308_s1] ss:$0 sm:$0xff]  ;;  %19 = vst.msk [vmem:[#allocation3] sm:$0xf] %vm18_vm0, %v251_v2  ;;  %v32_v3 = vld [vmem:[%s307_s0 + $0x38] sm:$0xff]  ;;  %v31_v4 = vld [vmem:[%s307_s0 + $0x30] sm:$0xff] }
   0x2   :  { %v21_v5 = vshrl.u32 %v20_v0, 7  ;;  %17 = vst.msk [vmem:[#allocation2] sm:$0xf] %vm16_vm1, %v251_v2  ;;  %149 = vmatpush.msra.mxu0 %v32_v3  ;;  %vm165_vm2 = vcmask 1043456   ;;  %v30_v6 = vld [vmem:[%s307_s0 + $0x28] sm:$0xff] }
   0x3   :  { %7 = vsyncpa [#allocation5], 0  ;;  %v29_v8 = vld [vmem:[%s307_s0 + $0x20] sm:$0xff]  ;;  %v28_v10 = vld [vmem:[%s307_s0 + $0x18] sm:$0xff]  ;;  %v252_v13 = vmov 0   ;;  %v253_v15 = vmov 1.0  }
   0x4   :  { %vm24_vm3 = vcmp.eq.s32.totalorder %v222_v1, %v21_v5  ;;  %150 = vmatpush.msra.mxu0 %v31_v4  ;;  %v27_v11 = vld [vmem:[%s307_s0 + $0x10] sm:$0xff]  ;;  %v26_v12 = vld [vmem:[%s307_s0 + $0x8] sm:$0xff]  ;;  %221 = vset.pattern.permute.xlu0 %v252_v13  ;;  %v25_v14 = vld [vmem:[%s307_s0] sm:$0xff]  ;;  %s254_s0 = smov [#allocation4]   ;;  %s206_s29 = sshll.u32 %s309_s2, 4  ;;  %s207_s29 = int_to_ptr.hbm [resolvable:$true] %s206_s29 }
   0x5   :  { %v215_v7 = vsel %vm24_vm3, 1.0, %v251_v2  ;;  %s204_s26 = sshll.u32 %s254_s0, 4  ;;  %s205_s26 = int_to_ptr.vmem [resolvable:$true] %s204_s26 }
   0x6   :  { %v166_v9 = vsel %vm165_vm2, %v215_v7, 0.0  ;;  %151 = vmatpush.msra.mxu0 %v30_v6 }
   0x7   :  { %167 = vadd.xlane.f32.xlu0 %v166_v9 }
   0x8   :  { %152 = vmatpush.msra.mxu0 %v29_v8  ;;  %v164_v16 = vld [vmem:[#allocation3] sm:$0xf] }
   0x9   :  { %v138_v21 = vld [vmem:[#allocation2] sm:$0xf] }
   0xa   :  { %153 = vmatpush.msra.mxu0 %v28_v10 }
   0xc   :  { %154 = vmatpush.msra.mxu0 %v27_v11 }
   0xe   :  { %155 = vmatpush.msra.mxu0 %v26_v12 }
  0x10   :  { %156 = vmatpush.msra.mxu0 %v25_v14 }
  0x11   :  { %216 = vmatmul.msk.f32.vlgmr.msra.gmra.mxu0 %vm24_vm3, %v253_v15 }
  0x7a   :  { %v168_v17 = vpop.xlane.xlu0 %167 }
  0x7b   :  { %v169_v18 = vadd.f32 %v168_v17, %v164_v16 }
  0x7d   :  { %171 = vst.msk [vmem:[#allocation3] sm:$0xf] %vm18_vm0, %v169_v18 }
  0x84   :  { %v175_v19 = vld [vmem:[#allocation3] sm:$0xf] }
  0x85   :  { %v176_v20 = vmax.f32 %v175_v19, 1.0 }
  0x87   :  { %180 = vperm.xlu0 %221, %v176_v20  }
  0x8e   :  { %v158_v22 = vpop.f32.mrf.mxu0 }
  0x8f   :  { %v161_v23 = vadd.f32 %v158_v22, %v138_v21 }
  0x91   :  { %163 = vst.msk [vmem:[#allocation2] sm:$0xf] %vm16_vm1, %v161_v23 }
  0x98   :  { %v177_v33 = vld [vmem:[#allocation2] sm:$0xf] }
  0xf9   :  { %v181_v24 = vpop.permute.xlu0 %180 }
  0xfa   :  { %223 = vrcp.f32 %v181_v24  ;;  %v194_v28 = vand.u32 2147483648, %v181_v24  ;;  %v192_v30 = vand.u32 2147483647, %v181_v24  ;;  %vm188_vm5 = vweird.f32 %v181_v24 }
  0xfc   :  { %v195_v32 = vor.u32 1.1754944e-38, %v194_v28  ;;  %vm193_vm7 = vcmp.eq.f32.partialorder %v192_v30, 8.507059e+37 }
 0x100   :  { %v224_v25 = vpop.eup %223 }
 0x101   :  { %v184_v26 = vmul.f32 %v224_v25, %v181_v24  ;;  %vm189_vm4 = vweird.f32 %v224_v25 }
 0x102   :  { %vm190_vm6 = vmor %vm188_vm5, %vm189_vm4 }
 0x103   :  { %v185_v27 = vsub.f32 1.0, %v184_v26 }
 0x105   :  { %v186_v29 = vmul.f32 %v224_v25, %v185_v27 }
 0x107   :  { %v187_v31 = vadd.f32 %v224_v25, %v186_v29 }
 0x109   :  { %v191_v34 = vsel %vm190_vm6, %v224_v25, %v187_v31 }
 0x10a   :  { %v196_v35 = vsel %vm193_vm7, %v195_v32, %v191_v34 }
 0x10b   :  { %v197_v36 = vmul.f32 %v196_v35, %v177_v33 }
 0x10d   :  { %198 = vst.msk [vmem:[#allocation4] sm:$0xf] %vm16_vm1, %v197_v36 }
 0x10e   :  { %209 = dma.vmem_to_hbm [thread:$0]  %s205_s26, 64, %s207_s29, [#allocation5]  }
 0x10f   :  { %249 = dma.done.wait [#allocation5], 64  }
 0x110   :  { %250 = vsyncadd [#allocation5], 4294967232 }
 0x111   :  { %214 = vsyncpa [#allocation5], 1 }

</bundles_post_ra>
